<compile_context>
chip_gen: v7x
topology: tpu7x:2x2x1
jax: 0.10.0
libtpu: 0.0.40
codegen_flags: <defaults>
</compile_context>

<pallas_src>
import functools

import jax
import jax.numpy as jnp
from jax import lax
from jax.experimental import pallas as pl
from jax.experimental.pallas import tpu as pltpu


# --------------------------- Pallas kernel (fused GEMM + mean add) ---------------------------

def _shape_ensemble_kernel(params_ref, comps_ref, mean_ref, out_ref):
    # params_ref: (TB, C)  shape-parameter tile
    # comps_ref:  (C, F)   flattened eigen-shape components, F = P*D on the lanes
    # mean_ref:   (1, F)   flattened mean shape
    # out_ref:    (TB, F)  ensembled shapes (lane-dense, unmasked stores when F % 128 == 0)
    acc = jnp.dot(params_ref[...], comps_ref[...],
                  preferred_element_type=jnp.float32,
                  precision=lax.Precision.HIGHEST)
    out_ref[...] = (acc + mean_ref[...]).astype(out_ref.dtype)


def _round_up(x, m):
    return ((x + m - 1) // m) * m


# --------------------------- ShapeLayer forward wrapper ---------------------------

@functools.partial(jax.jit, static_argnames=("max_tb",))
def shape_layer_forward(shape_params, shape_mean, shape_components, *, max_tb=2048):
    """ShapeLayer.forward.

    shape_params:     (B, C) or (B, C, 1, 1)   shape parameters
    shape_mean:       (P, D)                   mean shape       (buffer _shape_mean)
    shape_components: (C, P, D)                PCA components   (buffer _shape_components)
    returns:          (B, P, D)                ensembled shapes (float32, like torch buffers)
    """
    B = shape_params.shape[0]
    C, P, D = shape_components.shape
    F = P * D

    # torch buffers are registered as .float(); metadata-only reshapes under jit.
    params = shape_params.reshape(B, C).astype(jnp.float32)
    comps = shape_components.reshape(C, F).astype(jnp.float32)
    mean = shape_mean.reshape(1, F).astype(jnp.float32)

    # Batch-tile selection:
    #  * tiny B: one tile equal to the full batch (block == full dim, no (8,128) issue)
    #  * otherwise: at least 2 tiles (v7x megacore), tile a multiple of 8, capped at
    #    max_tb so a single step moves enough bytes to hide the per-step overhead.
    if B <= 8:
        tb = B
    else:
        tb = min(max_tb, _round_up(pl.cdiv(B, 2), 8))
    n_tiles = pl.cdiv(B, tb)   # partial last tile is masked by Pallas -- no pad, no slice

    out = pl.pallas_call(
        _shape_ensemble_kernel,
        out_shape=jax.ShapeDtypeStruct((B, F), jnp.float32),
        grid_spec=pltpu.PrefetchScalarGridSpec(
            num_scalar_prefetch=0,
            grid=(n_tiles,),
            in_specs=[
                pl.BlockSpec((tb, C), lambda i: (i, 0)),   # params tile (per-step read)
                pl.BlockSpec((C, F), lambda i: (0, 0)),    # components: resident in VMEM
                pl.BlockSpec((1, F), lambda i: (0, 0)),    # mean shape: resident in VMEM
            ],
            out_specs=pl.BlockSpec((tb, F), lambda i: (i, 0)),
        ),
        compiler_params=pltpu.CompilerParams(
            dimension_semantics=("parallel",)),
    )(params, comps, mean)

    return out.reshape(B, P, D)


# --------------------------- main ---------------------------

if __name__ == "__main__":
    # Small shapes consistent with the module: PCA landmark shapes.
    num_components = 8      # number of eigen shapes (ShapeLayer.num_params)
    num_points = 64         # landmarks per shape
    dim = 2                 # 2-D landmarks -> F = 128 (lane-dense output)
    batch = 2

    key = jax.random.PRNGKey(0)
    k_shapes, k_params = jax.random.split(key)

    # synthetic "shapes" ndarray as handed to ShapeLayer.__init__:
    # shapes[0] = mean shape, shapes[1:] = PCA components
    shapes = jax.random.normal(
        k_shapes, (1 + num_components, num_points, dim), dtype=jnp.float32)
    shape_mean = shapes[0]            # (P, D)     -> torch buffer _shape_mean (1, P, D)
    shape_components = shapes[1:]     # (C, P, D)  -> torch buffer _shape_components (1, C, P, D)

    # shape parameters, shaped (B, C, 1, 1) as the torch forward's expand_as expects
    shape_params = 0.1 * jax.random.normal(
        k_params, (batch, num_components, 1, 1), dtype=jnp.float32)

    # pure-JAX reference mirroring the torch forward exactly:
    # mean.expand(B,...) + (components.expand(B,...) * params.expand_as(components)).sum(dim=1)
    def ref_fn(sp, sm, sc):
        b = sp.shape[0]
        return sm[None] + jnp.sum(sc[None] * sp.reshape(b, -1, 1, 1), axis=1)

    # 1) tiny-B path (single full-batch tile)
    out = shape_layer_forward(shape_params, shape_mean, shape_components)
    out = jax.block_until_ready(out)
    ref = ref_fn(shape_params, shape_mean, shape_components)
    assert out.shape == (batch, num_points, dim), out.shape
    assert jnp.allclose(out, ref, atol=1e-5, rtol=1e-5), "mismatch vs reference (small B)"

    # 2) multi-tile path with B % tb != 0 (exercises the masked partial last tile)
    big_batch = 37
    big_params = 0.1 * jax.random.normal(
        jax.random.PRNGKey(1), (big_batch, num_components, 1, 1), dtype=jnp.float32)
    out_big = shape_layer_forward(big_params, shape_mean, shape_components)
    out_big = jax.block_until_ready(out_big)
    ref_big = ref_fn(big_params, shape_mean, shape_components)
    assert out_big.shape == (big_batch, num_points, dim), out_big.shape
    assert jnp.allclose(out_big, ref_big, atol=1e-5, rtol=1e-5), "mismatch vs reference (big B)"

    print("KERNEL_OK")
</pallas_src>

<mosaic_0001>
module attributes {stable_mosaic.version = 11 : i64} {
  func.func @_shape_ensemble_kernel(%arg0: i32, %arg1: memref<2x8xf32, #tpu.memory_space<vmem>>, %arg2: memref<8x128xf32, #tpu.memory_space<vmem>>, %arg3: memref<1x128xf32, #tpu.memory_space<vmem>>, %arg4: memref<2x128xf32, #tpu.memory_space<vmem>>) attributes {dimension_semantics = [#tpu.dimension_semantics<parallel>], iteration_bounds = array<i64: 1>, scalar_prefetch = 0 : i64, scratch_operands = 0 : i64, tpu.core_type = #tpu.core_type<tc>, window_params = [{transform_indices = @transform_0, window_bounds = array<i64: 2, 8>}, {pipeline_mode = #tpu.pipeline_mode<synchronous>, transform_indices = @transform_1, window_bounds = array<i64: 8, 128>}, {pipeline_mode = #tpu.pipeline_mode<synchronous>, transform_indices = @transform_2, window_bounds = array<i64: 1, 128>}, {transform_indices = @transform_3, window_bounds = array<i64: 2, 128>}]} {
    %c0 = arith.constant 0 : index
    %c0_0 = arith.constant 0 : index
    %0 = vector.load %arg1[%c0, %c0_0] : memref<2x8xf32, #tpu.memory_space<vmem>>, vector<2x8xf32>
    %c0_1 = arith.constant 0 : index
    %c0_2 = arith.constant 0 : index
    %1 = vector.load %arg2[%c0_1, %c0_2] : memref<8x128xf32, #tpu.memory_space<vmem>>, vector<8x128xf32>
    %cst = arith.constant dense<0.000000e+00> : vector<2x128xf32>
    %2 = tpu.matmul %0, %1, %cst {dimension_numbers = #tpu.dot_dimension_numbers<[1], [0], [0], [1], [0, 0, 1, 1], [], []>, precision = #tpu.contract_precision<fp32>} : vector<2x8xf32>, vector<8x128xf32>, vector<2x128xf32> -> vector<2x128xf32>
    %c0_3 = arith.constant 0 : index
    %c0_4 = arith.constant 0 : index
    %3 = vector.load %arg3[%c0_3, %c0_4] : memref<1x128xf32, #tpu.memory_space<vmem>>, vector<1x128xf32>
    %4 = vector.broadcast %3 : vector<1x128xf32> to vector<2x128xf32>
    %5 = arith.addf %2, %4 : vector<2x128xf32>
    %c0_5 = arith.constant 0 : index
    %c0_6 = arith.constant 0 : index
    %6 = vector.load %arg4[%c0_5, %c0_6] : memref<2x128xf32, #tpu.memory_space<vmem>>, vector<2x128xf32>
    tpu.vector_store %arg4[%c0_5, %c0_6], %5 {strides = array<i32>} : memref<2x128xf32, #tpu.memory_space<vmem>>, vector<2x128xf32>,
    return
  }
  func.func @transform_0(%arg0: i32) -> (i32, i32) {
    %c0_i32 = arith.constant 0 : i32
    %c0_i32_0 = arith.constant 0 : i32
    return %arg0, %c0_i32 : i32, i32
  }
  func.func @transform_1(%arg0: i32) -> (i32, i32) {
    %c0_i32 = arith.constant 0 : i32
    %c0_i32_0 = arith.constant 0 : i32
    %c0_i32_1 = arith.constant 0 : i32
    return %c0_i32, %c0_i32_0 : i32, i32
  }
  func.func @transform_2(%arg0: i32) -> (i32, i32) {
    %c0_i32 = arith.constant 0 : i32
    %c0_i32_0 = arith.constant 0 : i32
    %c0_i32_1 = arith.constant 0 : i32
    return %c0_i32, %c0_i32_0 : i32, i32
  }
  func.func @transform_3(%arg0: i32) -> (i32, i32) {
    %c0_i32 = arith.constant 0 : i32
    %c0_i32_0 = arith.constant 0 : i32
    return %arg0, %c0_i32 : i32, i32
  }
}

</mosaic_0001>

<bundles_post_ra>
// kernel: shape_layer_forward.1
= control target key start
LH: loop header
LB: loop body
LE: loop exit
PB: predicated region body
PF: predicated region fallthrough
CT: control target
= control target key end

     0   :  { %vm23_vm0 = vcmask 64512   ;;  %v533_v0 = vmov 0.0   ;;  %vm534_vm1 = vmmov 0   ;;  %s573_s1 = inlined_call_operand.vmem [shape: f32[8,128], index: 1, kind: input, shape index: {}]   ;;  %s574_s0 = inlined_call_operand.vmem [shape: f32[2,8], index: 0, kind: input, shape index: {}]   ;;  %s575_s2 = inlined_call_operand.vmem [shape: f32[1,128], index: 2, kind: input, shape index: {}]   ;;  %s576_s3 = inlined_call_operand.vmem [shape: f32[2,128], index: 3, kind: output, shape index: {}]  }
   0x1   :  { %506 = vmatprep.subr.mxu0 %v533_v0  ;;  %v15_v1 = vld [vmem:[%s573_s1] sm:$0xff]  ;;  %508 = vmatprep.mubr.msk.f32.mxu0 %vm534_vm1, %v533_v0 }
   0x2   :  { %v14_v2 = vld [vmem:[%s574_s0] sm:$0x3]  ;;  %v28_v3 = vand.u32 4294901760, %v15_v1  ;;  %491 = vmatprep.subr.mxu1 %v533_v0  ;;  %493 = vmatprep.mubr.msk.f32.mxu1 %vm534_vm1, %v533_v0 }
   0x3   :  { %v25_v4 = vsel %vm23_vm0, %v14_v2, 0  ;;  %v478_v16 = vld [vmem:[%s575_s2] ss:$0 sm:$0xff] }
   0x4   :  { %v93_v5 = vand.u32 4294901760, %v25_v4  ;;  %v105_v6 = vsub.f32 %v15_v1, %v28_v3  ;;  %507 = vmatpush3.msra.mxu0 %v28_v3  ;;  %492 = vmatpush3.msra.mxu1 %v28_v3 }
   0x5   :  { %496 = vmatprep.subr.mxu1 %v533_v0  ;;  %511 = vmatprep.subr.mxu0 %v533_v0 }
   0x6   :  { %v94_v7 = vsub.f32 %v25_v4, %v93_v5  ;;  %v106_v8 = vand.u32 4294901760, %v105_v6 }
   0x8   :  { %v95_v9 = vand.u32 4294901760, %v94_v7  ;;  %v107_v10 = vsub.f32 %v105_v6, %v106_v8 }
   0xa   :  { %509 = vmatmul.mubr.f32.vlgmr.msra.gmra.mrb[0].mxu0 %v95_v9  ;;  %v96_v11 = vsub.f32 %v94_v7, %v95_v9  ;;  %v108_v12 = vand.u32 4294901760, %v107_v10 }
   0xb   :  { %512 = vmatpush3.msra.mxu0 %v106_v8  ;;  %513 = vmatprep.mubr.msk.f32.mxu0 %vm534_vm1, %v533_v0 }
   0xc   :  { %v97_v13 = vand.u32 4294901760, %v96_v11  ;;  %516 = vmatprep.subr.mxu0 %v533_v0 }
   0xe   :  { %494 = vmatmul.mubr.f32.vlgmr.msra.gmra.mrb[0].mxu1 %v97_v13 }
   0xf   :  { %497 = vmatpush3.msra.mxu1 %v108_v12  ;;  %498 = vmatprep.mubr.msk.f32.mxu1 %vm534_vm1, %v533_v0 }
  0x10   :  { %501 = vmatprep.subr.mxu1 %v533_v0 }
  0x12   :  { %514 = vmatmul.mubr.f32.vlgmr.msra.gmra.mrb[0].mxu0 %v93_v5 }
  0x13   :  { %517 = vmatpush3.msra.mxu0 %v28_v3  ;;  %518 = vmatprep.mubr.msk.f32.mxu0 %vm534_vm1, %v533_v0 }
  0x16   :  { %499 = vmatmul.mubr.f32.vlgmr.msra.gmra.mrb[0].mxu1 %v93_v5 }
  0x17   :  { %502 = vmatpush3.msra.mxu1 %v105_v6  ;;  %503 = vmatprep.mubr.msk.f32.mxu1 %vm534_vm1, %v533_v0 }
  0x1a   :  { %519 = vmatmul.mubr.f32.vlgmr.msra.gmra.mrb[0].mxu0 %v93_v5 }
  0x1e   :  { %504 = vmatmul.mubr.f32.vlgmr.msra.gmra.mrb[0].mxu1 %v94_v7 }
  0xed   :  { %v469_v14 = vpop.f32.mrb[0].mxu0 }
  0xee   :  { %v520_v15 = vpop.f32.mrb[1].mxu0 }
  0xf1   :  { %v249_v17 = vpop.f32.mrb[0].mxu1 }
  0xf2   :  { %v521_v18 = vadd.f32 %v478_v16, %v249_v17  ;;  %v505_v19 = vpop.f32.mrb[1].mxu1 }
  0xf4   :  { %v522_v20 = vadd.f32 %v521_v18, %v469_v14 }
  0xf6   :  { %473 = vst [vmem:[%s576_s3] sm:$0x3] %v522_v20 }

</bundles_post_ra>
